<compile_context>
chip_gen: v7x
topology: tpu7x:2x2x1
jax: 0.10.0
libtpu: 0.0.40
codegen_flags: <defaults>
</compile_context>

<pallas_src>
import math

import jax
import jax.numpy as jnp
from jax.experimental import pallas as pl
from jax.experimental.pallas import tpu as pltpu


def _wsl1_kernel(a_ref, b_ref, w_ref, seg_ref, o_ref):
    """One (Ht, Wl) lane-dense tile of the flattened, folded problem.

    a_ref, b_ref : (Ht, Wl) pred / target tile (original dtype).
    w_ref        : (Ht, k)  per-original-row cosine weights for this tile.
    seg_ref      : (Wl, k)  constant 0/1 segment matrix (lane -> row in fold).
    o_ref        : (Ht, k)  f32 accumulator, resident across the row-tile axis.
    """
    t = pl.program_id(1)

    @pl.when(t == 0)
    def _():
        o_ref[...] = jnp.zeros_like(o_ref)

    d = jnp.abs(a_ref[...].astype(jnp.float32) - b_ref[...].astype(jnp.float32))
    # Per-original-row L1 sums on the (idle) MXU: (Ht, Wl) @ (Wl, k) -> (Ht, k).
    rowsum = jnp.dot(d, seg_ref[...], preferred_element_type=jnp.float32)
    # Weighted element-wise accumulate (VPU only; no cross-sublane reduce).
    o_ref[...] += w_ref[...] * rowsum


def _fold_factor(W):
    """Rows folded per lane row so the lane width k*W is a multiple of 128."""
    k = 128 // math.gcd(W, 128)          # minimal k with (k*W) % 128 == 0
    # Widen so the (Ht, k) weight / accumulator blocks are not too lane-sparse,
    # without making the MXU segment-reduce (2k flops/element) expensive.
    while (k < 8 or k * W < 512) and k < 128 and 2 * k * W <= 8192:
        k *= 2
    return k


def _pick_row_tile(rows_per_shard, lane_w, itemsize, align, target_bytes):
    """Largest sublane-aligned divisor of rows_per_shard within target_bytes."""
    max_rows = max(1, target_bytes // (lane_w * itemsize))
    if rows_per_shard <= max_rows:
        return rows_per_shard            # full extent -> always a legal block
    c = (max_rows // align) * align
    while c >= align:
        if rows_per_shard % c == 0:
            return c
        c -= align
    # `align` divides rows_per_shard by construction whenever it is >= align.
    return min(rows_per_shard, align)


def wsl1_loss(pred, target, top, *, loss_weight=1.0, h=1024, reduction="mean",
              target_block_bytes=6 * 1024 * 1024):
    """Pallas implementation of WSL1Loss.forward.

    Args:
      pred:   (N, C, H, W) float array.
      target: (N, C, H, W) float array.
      top:    (N,) per-sample start latitude.
    """
    if reduction not in ("mean", "sum"):
        # TODO(synk): reduction='none' (full (N,C,H,W) weighted-loss map) not implemented.
        raise NotImplementedError("reduction='none' not implemented")
    if pred.ndim != 4 or pred.shape != target.shape:
        raise ValueError("pred/target must both have shape (N, C, H, W)")

    N, C, H, W = pred.shape
    itemsize = pred.dtype.itemsize

    # Hoisted per-row cosine weight; np.linspace(0, H-1, H) == arange(H).
    row = jnp.arange(H, dtype=jnp.float32)
    phase = (top.astype(jnp.float32)[:, None] + row[None, :] - h / 2.0 + 0.5) * (
        math.pi / h
    )
    weight_nh = jnp.cos(phase)                                     # (N, H)
    wrow = jnp.broadcast_to(weight_nh[:, None, :], (N, C, H)).reshape(N * C * H)

    # ---- static tiling decisions (all Python / trace time) -------------------
    R = N * C * H                           # original rows (weight is per-row)
    k = _fold_factor(W)                     # rows folded into one lane-dense row
    Wl = k * W                              # lane width, multiple of 128
    align = max(8, 32 // itemsize)          # sublane tile: 8 f32 / 16 bf16 / 32 i8
    shards = 2 if (R + k - 1) // k >= 2 else 1   # leading 'parallel' axis (v7x 2 TCs)

    base = k * shards * align if R >= k * shards * align else k * shards
    R_pad = -(-R // base) * base
    pad_rows = R_pad - R

    flat_a = pred.reshape(-1)
    flat_b = target.reshape(-1)
    if pad_rows:
        flat_a = jnp.pad(flat_a, (0, pad_rows * W))
        flat_b = jnp.pad(flat_b, (0, pad_rows * W))
        wrow = jnp.pad(wrow, (0, pad_rows))        # zero weight => no contribution

    rows_per_shard = R_pad // (k * shards)
    Ht = _pick_row_tile(rows_per_shard, Wl, itemsize, align, target_block_bytes)

    a3 = flat_a.reshape(shards, rows_per_shard, Wl)
    b3 = flat_b.reshape(shards, rows_per_shard, Wl)
    w3 = wrow.astype(jnp.float32).reshape(shards, rows_per_shard, k)

    # Constant 0/1 segment matrix: lane l belongs to original row (l // W).
    seg = (
        jnp.arange(Wl, dtype=jnp.int32)[:, None] // W
        == jnp.arange(k, dtype=jnp.int32)[None, :]
    ).astype(jnp.float32)                                          # (Wl, k)

    grid = (shards, rows_per_shard // Ht)
    partial = pl.pallas_call(
        _wsl1_kernel,
        grid=grid,
        in_specs=[
            pl.BlockSpec((None, Ht, Wl), lambda s, t: (s, t, 0)),  # pred tile
            pl.BlockSpec((None, Ht, Wl), lambda s, t: (s, t, 0)),  # target tile
            pl.BlockSpec((None, Ht, k), lambda s, t: (s, t, 0)),   # row weights
            pl.BlockSpec((Wl, k), lambda s, t: (0, 0)),            # segment matrix
        ],
        out_specs=pl.BlockSpec((None, Ht, k), lambda s, t: (s, 0, 0)),
        out_shape=jax.ShapeDtypeStruct((shards, Ht, k), jnp.float32),
        compiler_params=pltpu.CompilerParams(
            dimension_semantics=("parallel", "arbitrary"),
            vmem_limit_bytes=48 * 1024 * 1024,
        ),
    )(a3, b3, w3, seg)

    weighted_sum = jnp.sum(partial)
    if reduction == "sum":
        return loss_weight * weighted_sum

    # Sum of the broadcast (N, C, H, W) weight, computed analytically.
    weight_total = jnp.float32(C * W) * jnp.sum(weight_nh)
    return loss_weight * weighted_sum / weight_total


def _reference_wsl1(pred, target, top, *, loss_weight=1.0, h=1024, reduction="mean"):
    """Plain-JAX reference mirroring the PyTorch forward."""
    N, C, H, W = pred.shape
    lin = jnp.linspace(0.0, H - 1, H, dtype=jnp.float32)
    w = top.astype(jnp.float32)[:, None] + lin[None, :]            # (N, H)
    w = (w - h / 2.0 + 0.5) * (math.pi / h)
    w = jnp.cos(w)[:, None, :, None]                               # (N, 1, H, 1)
    w = jnp.broadcast_to(w, (N, C, H, W))
    loss = jnp.abs(pred.astype(jnp.float32) - target.astype(jnp.float32)) * w
    if reduction == "sum":
        return loss_weight * jnp.sum(loss)
    return loss_weight * jnp.sum(loss) / jnp.sum(w)


if __name__ == "__main__":
    key = jax.random.PRNGKey(0)
    k1, k2, k3 = jax.random.split(key, 3)

    H_PARAM = 1024

    # Case 1: module-like small shape (N, C, H, W) = (2, 4, 16, 16).
    N, C, H, W = 2, 4, 16, 16
    pred = jax.random.normal(k1, (N, C, H, W), dtype=jnp.float32)
    target = jax.random.normal(k2, (N, C, H, W), dtype=jnp.float32)
    top = jax.random.uniform(
        k3, (N,), dtype=jnp.float32, minval=0.0, maxval=float(H_PARAM - H)
    )

    out = jax.block_until_ready(
        wsl1_loss(pred, target, top, loss_weight=1.0, h=H_PARAM, reduction="mean")
    )
    ref = _reference_wsl1(pred, target, top, loss_weight=1.0, h=H_PARAM,
                          reduction="mean")
    assert jnp.allclose(out, ref, rtol=2e-3, atol=1e-3), (out, ref)

    out_s = jax.block_until_ready(
        wsl1_loss(pred, target, top, loss_weight=0.5, h=H_PARAM, reduction="sum")
    )
    ref_s = _reference_wsl1(pred, target, top, loss_weight=0.5, h=H_PARAM,
                            reduction="sum")
    assert jnp.allclose(out_s, ref_s, rtol=2e-3, atol=1e-3), (out_s, ref_s)

    # Case 2: odd W (48) -> exercises zero-weight row padding and the multi-step
    # resident-accumulator path (tiny block budget forces several grid steps).
    N2, C2, H2, W2 = 2, 3, 64, 48
    p2 = jax.random.normal(k1, (N2, C2, H2, W2), dtype=jnp.float32)
    t2 = jax.random.normal(k2, (N2, C2, H2, W2), dtype=jnp.float32)
    top2 = jax.random.uniform(
        k3, (N2,), dtype=jnp.float32, minval=0.0, maxval=float(H_PARAM - H2)
    )
    out2 = jax.block_until_ready(
        wsl1_loss(p2, t2, top2, loss_weight=1.0, h=H_PARAM, reduction="mean",
                  target_block_bytes=8192)
    )
    ref2 = _reference_wsl1(p2, t2, top2, loss_weight=1.0, h=H_PARAM,
                           reduction="mean")
    assert jnp.allclose(out2, ref2, rtol=2e-3, atol=1e-3), (out2, ref2)

    print("KERNEL_OK")
</pallas_src>

<mosaic_0001>
module attributes {stable_mosaic.version = 11 : i64} {
  func.func @_wsl1_kernel(%arg0: i32, %arg1: i32, %arg2: memref<1x2x512xf32, #tpu.memory_space<vmem>>, %arg3: memref<1x2x512xf32, #tpu.memory_space<vmem>>, %arg4: memref<1x2x32xf32, #tpu.memory_space<vmem>>, %arg5: memref<512x32xf32, #tpu.memory_space<vmem>>, %arg6: memref<1x2x32xf32, #tpu.memory_space<vmem>>) attributes {dimension_semantics = [#tpu.dimension_semantics<parallel>, #tpu.dimension_semantics<arbitrary>], iteration_bounds = array<i64: 2, 1>, scalar_prefetch = 0 : i64, scratch_operands = 0 : i64, tpu.core_type = #tpu.core_type<tc>, window_params = [{transform_indices = @transform_0, window_bounds = array<i64: 1, 2, 512>}, {transform_indices = @transform_1, window_bounds = array<i64: 1, 2, 512>}, {transform_indices = @transform_2, window_bounds = array<i64: 1, 2, 32>}, {pipeline_mode = #tpu.pipeline_mode<synchronous>, transform_indices = @transform_3, window_bounds = array<i64: 512, 32>}, {transform_indices = @transform_4, window_bounds = array<i64: 1, 2, 32>}]} {
    %c0_i32 = arith.constant 0 : i32
    %0 = arith.cmpi eq, %arg1, %c0_i32 : i32
    %1 = arith.extui %0 : i1 to i32
    %c0_i32_0 = arith.constant 0 : i32
    %2 = arith.cmpi ne, %1, %c0_i32_0 : i32
    scf.if %2 {
      %cst_17 = arith.constant 0.000000e+00 : f32
      %20 = vector.broadcast %cst_17 : f32 to vector<2x32xf32>
      %c0_18 = arith.constant 0 : index
      %c0_19 = arith.constant 0 : index
      %c0_20 = arith.constant 0 : index
      %21 = vector.load %arg6[%c0_18, %c0_19, %c0_20] : memref<1x2x32xf32, #tpu.memory_space<vmem>>, vector<1x2x32xf32>
      %22 = vector.shape_cast %21 : vector<1x2x32xf32> to vector<2x32xf32>
      %23 = vector.shape_cast %20 : vector<2x32xf32> to vector<1x2x32xf32>
      tpu.vector_store %arg6[%c0_18, %c0_19, %c0_20], %23 {strides = array<i32>} : memref<1x2x32xf32, #tpu.memory_space<vmem>>, vector<1x2x32xf32>,
    } else {
    }
    %c0 = arith.constant 0 : index
    %c0_1 = arith.constant 0 : index
    %c0_2 = arith.constant 0 : index
    %3 = vector.load %arg2[%c0, %c0_1, %c0_2] : memref<1x2x512xf32, #tpu.memory_space<vmem>>, vector<1x2x512xf32>
    %4 = vector.shape_cast %3 : vector<1x2x512xf32> to vector<2x512xf32>
    %c0_3 = arith.constant 0 : index
    %c0_4 = arith.constant 0 : index
    %c0_5 = arith.constant 0 : index
    %5 = vector.load %arg3[%c0_3, %c0_4, %c0_5] : memref<1x2x512xf32, #tpu.memory_space<vmem>>, vector<1x2x512xf32>
    %6 = vector.shape_cast %5 : vector<1x2x512xf32> to vector<2x512xf32>
    %7 = arith.subf %4, %6 : vector<2x512xf32>
    %8 = math.absf %7 : vector<2x512xf32>
    %c0_6 = arith.constant 0 : index
    %c0_7 = arith.constant 0 : index
    %9 = vector.load %arg5[%c0_6, %c0_7] : memref<512x32xf32, #tpu.memory_space<vmem>>, vector<512x32xf32>
    %cst = arith.constant dense<0.000000e+00> : vector<2x32xf32>
    %10 = tpu.matmul %8, %9, %cst {dimension_numbers = #tpu.dot_dimension_numbers<[1], [0], [0], [1], [0, 0, 1, 1], [], []>} : vector<2x512xf32>, vector<512x32xf32>, vector<2x32xf32> -> vector<2x32xf32>
    %c0_8 = arith.constant 0 : index
    %c0_9 = arith.constant 0 : index
    %c0_10 = arith.constant 0 : index
    %11 = vector.load %arg6[%c0_8, %c0_9, %c0_10] : memref<1x2x32xf32, #tpu.memory_space<vmem>>, vector<1x2x32xf32>
    %12 = vector.shape_cast %11 : vector<1x2x32xf32> to vector<2x32xf32>
    %c0_11 = arith.constant 0 : index
    %c0_12 = arith.constant 0 : index
    %c0_13 = arith.constant 0 : index
    %13 = vector.load %arg4[%c0_11, %c0_12, %c0_13] : memref<1x2x32xf32, #tpu.memory_space<vmem>>, vector<1x2x32xf32>
    %14 = vector.shape_cast %13 : vector<1x2x32xf32> to vector<2x32xf32>
    %15 = arith.mulf %14, %10 : vector<2x32xf32>
    %16 = arith.addf %12, %15 : vector<2x32xf32>
    %c0_14 = arith.constant 0 : index
    %c0_15 = arith.constant 0 : index
    %c0_16 = arith.constant 0 : index
    %17 = vector.load %arg6[%c0_14, %c0_15, %c0_16] : memref<1x2x32xf32, #tpu.memory_space<vmem>>, vector<1x2x32xf32>
    %18 = vector.shape_cast %17 : vector<1x2x32xf32> to vector<2x32xf32>
    %19 = vector.shape_cast %16 : vector<2x32xf32> to vector<1x2x32xf32>
    tpu.vector_store %arg6[%c0_14, %c0_15, %c0_16], %19 {strides = array<i32>} : memref<1x2x32xf32, #tpu.memory_space<vmem>>, vector<1x2x32xf32>,
    return
  }
  func.func @transform_0(%arg0: i32, %arg1: i32) -> (i32, i32, i32) {
    %c0_i32 = arith.constant 0 : i32
    %c0_i32_0 = arith.constant 0 : i32
    return %arg0, %arg1, %c0_i32 : i32, i32, i32
  }
  func.func @transform_1(%arg0: i32, %arg1: i32) -> (i32, i32, i32) {
    %c0_i32 = arith.constant 0 : i32
    %c0_i32_0 = arith.constant 0 : i32
    return %arg0, %arg1, %c0_i32 : i32, i32, i32
  }
  func.func @transform_2(%arg0: i32, %arg1: i32) -> (i32, i32, i32) {
    %c0_i32 = arith.constant 0 : i32
    %c0_i32_0 = arith.constant 0 : i32
    return %arg0, %arg1, %c0_i32 : i32, i32, i32
  }
  func.func @transform_3(%arg0: i32, %arg1: i32) -> (i32, i32) {
    %c0_i32 = arith.constant 0 : i32
    %c0_i32_0 = arith.constant 0 : i32
    %c0_i32_1 = arith.constant 0 : i32
    return %c0_i32, %c0_i32_0 : i32, i32
  }
  func.func @transform_4(%arg0: i32, %arg1: i32) -> (i32, i32, i32) {
    %c0_i32 = arith.constant 0 : i32
    %c0_i32_0 = arith.constant 0 : i32
    %c0_i32_1 = arith.constant 0 : i32
    return %arg0, %c0_i32, %c0_i32_0 : i32, i32, i32
  }
}

</mosaic_0001>

<bundles_post_ra>
// kernel: tpu_custom_call.1
= control target key start
LH: loop header
LB: loop body
LE: loop exit
PB: predicated region body
PF: predicated region fallthrough
CT: control target
= control target key end

     0   :  { %9 = vsyncpa [#allocation3], 0  ;;  %s1286_s0 = inlined_call_operand.vmem [shape: f32[2,2,512], index: 0, kind: input, shape index: {}]   ;;  %s1287_s1 = inlined_call_operand.vmem [shape: f32[2,2,512], index: 1, kind: input, shape index: {}]   ;;  %s1288_s2 = inlined_call_operand.vmem [shape: f32[2,2,32], index: 2, kind: input, shape index: {}]   ;;  %s1289_s3 = inlined_call_operand.vmem [shape: f32[512,32], index: 3, kind: input, shape index: {}]   ;;  %s1290_s4 = inlined_call_operand.hbm [shape: f32[2,2,32], index: 4, kind: output, shape index: {}]  }
   0x1   :  { %11 = vsyncpa [#allocation3 + $0x1], 0  ;;  %s968_s15 = smov 0   ;;  %s970_s16 = smov 0  }
   0x2   :  { %s972_s17 = smov 0   ;;  %s974_s18 = smov 0  }
   0x3   :  { %s976_s19 = smov 0   ;;  %s978_s20 = smov 0  }
   0x4 LB: > { %s652_s21 = sadd.s32 4294967295, %s938_s20   ;;  %s653_s22 = sadd.s32 4294967294, %s938_s20   ;;  %s938_s20 = sphi %s978_s20, %s17_s20   ;;  %s934_s19 = sphi %s976_s19, %s1297_s19   ;;  %s930_s18 = sphi %s974_s18, %s1296_s18   ;;  %s926_s17 = sphi %s972_s17, %s1295_s17   ;;  %s922_s16 = sphi %s970_s16, %s1294_s16   ;;  %s918_s15 = sphi %s968_s15, %s1293_s15  }
   0x5   : > { %s29_s23 = sadd.s32 1, %s934_s19  ;;  %s141_s24 = sadd.s32 1, %s926_s17 }
   0x6   : > { %p31_p0 = scmp.ge.s32.totalorder %s29_s23, 2  ;;  %p151_p1 = scmp.ne.s32.totalorder %s926_s17, %s922_s16 }
   0x7   : > { %p152_p2 = scmp.eq.s32.totalorder %s652_s21, 1  ;;  %p157_p3 = scmp.ne.s32.totalorder %s922_s16, %s918_s15 }
   0x8   : > { %s1299_s23 = smov (%p31_p0, %s29_s23), 0  ;;  %p158_p5 = scmp.eq.s32.totalorder %s653_s22, 1 }
   0x9   : > { %p1008_p4 = por %p152_p2, %p151_p1  ;;  %s138_s26 = ssub.s32 %s934_s19, %s1299_s23 }
   0xa   : > { %p656_p6 = scmp.ge.s32.totalorder %s938_s20, 1  ;;  %p139_p7 = scmp.eq.s32.totalorder %s138_s26, 0 }
   0xb   : > { %p1015_p8 = por %p158_p5, %p157_p3  ;;  %p213_p9 = scmp.lt.s32.totalorder %s938_s20, 3 }
   0xc   : > { %s1021_s28 = scalar_select %p139_p7, %s926_s17, %s141_s24  }
   0xd   : > { %p214_p10 = pnand %p656_p6, %p213_p9 }
   0xe   : > { %v310_v0 = vld [vmem:[%s1289_s3 + $0x80] sm:$0xff] (!%p214_p10)  ;;  %v311_v1 = vld [vmem:[%s1289_s3 + $0x88] sm:$0xff] (!%p214_p10)  ;;  %v312_v11 = vld [vmem:[%s1289_s3 + $0x90] sm:$0xff] (!%p214_p10)  ;;  %p259_p11 = scmp.lt.s32.totalorder (!%p214_p10), %s930_s18, 1  ;;  %v940_v60 = vmov (!%p214_p10), 1983009808   ;;  %v363_v62 = vlaneseq (!%p214_p10) }
   0xf   : > { %217 = sbr.rel (%p214_p10) target bundleno = 286 (0x11e), region = 36  ;;  %v342_v2 = vld [vmem:[%s1289_s3 + $0x180] sm:$0xff] (!%p214_p10)  ;;  %v739_v3 = vpack.c.bf16 (!%p214_p10), %v311_v1, %v310_v0  ;;  %v343_v4 = vld [vmem:[%s1289_s3 + $0x188] sm:$0xff] (!%p214_p10)  ;;  %v313_v13 = vld [vmem:[%s1289_s3 + $0x98] sm:$0xff] (!%p214_p10)  ;;  %v361_v61 = vunpack.c.l.s4 (!%p214_p10), %v940_v60  ;;  %s256_s26 = sand.u32 (!%p214_p10), 1, %s922_s16   ;;  %vm288_vm0 = vcmask (!%p214_p10), 254976  }
  0x10   : > { %v294_v5 = vld [vmem:[%s1289_s3] sm:$0xff] (!%p214_p10)  ;;  %v295_v6 = vld [vmem:[%s1289_s3 + $0x8] sm:$0xff] (!%p214_p10)  ;;  %v771_v7 = vpack.c.bf16 (!%p214_p10), %v343_v4, %v342_v2  ;;  %v344_v14 = vld [vmem:[%s1289_s3 + $0x190] sm:$0xff] (!%p214_p10)  ;;  %v743_v16 = vpack.c.bf16 (!%p214_p10), %v313_v13, %v312_v11  ;;  %s657_s29 = sshll.u32 (!%p214_p10), %s256_s26, 1  ;;  %s664_s7 = sshll.u32 (!%p214_p10), %s930_s18, 5 }
  0x11   : > { %v741_v8 = vpack.c.bf16 (!%p214_p10), %v295_v6, %v294_v5  ;;  %v326_v9 = vld [vmem:[%s1289_s3 + $0x100] sm:$0xff] (!%p214_p10)  ;;  %v327_v10 = vld [vmem:[%s1289_s3 + $0x108] sm:$0xff] (!%p214_p10)  ;;  %740 = vmatprep.subr.bf16.mxu0 (!%p214_p10), %v739_v3  ;;  %v345_v15 = vld [vmem:[%s1289_s3 + $0x198] sm:$0xff] (!%p214_p10)  ;;  %v362_v11 = vunpack.c.0.s8 (!%p214_p10), %v361_v61  ;;  %s258_s30 = scalar_lea.vmem (!%p214_p10), [#allocation2], %s657_s29  ;;  %s527_s10 = scalar_lea.sflag (!%p214_p10), [#allocation3], %s256_s26 }
  0x12   : > { %v773_v12 = vpack.c.bf16 (!%p214_p10), %v327_v10, %v326_v9  ;;  %772 = vmatprep.subr.bf16.mxu1 (!%p214_p10), %v771_v7  ;;  %v775_v17 = vpack.c.bf16 (!%p214_p10), %v345_v15, %v344_v14  ;;  %v296_v18 = vld [vmem:[%s1289_s3 + $0x10] sm:$0xff] (!%p214_p10)  ;;  %v297_v19 = vld [vmem:[%s1289_s3 + $0x18] sm:$0xff] (!%p214_p10)  ;;  %v314_v23 = vld [vmem:[%s1289_s3 + $0xa0] sm:$0xff] (!%p214_p10)  ;;  %s540_s8 = sshll.u32 (!%p214_p10), %s258_s30, 4  ;;  %s1240_s8 = int_to_ptr.vmem [resolvable:$true] %s540_s8 }
  0x13   : > { %742 = vmatpush3.bf16.msra.mxu0 (!%p214_p10), %v741_v8  ;;  %v328_v20 = vld [vmem:[%s1289_s3 + $0x110] sm:$0xff] (!%p214_p10)  ;;  %v745_v21 = vpack.c.bf16 (!%p214_p10), %v297_v19, %v296_v18  ;;  %v329_v22 = vld [vmem:[%s1289_s3 + $0x118] sm:$0xff] (!%p214_p10)  ;;  %v315_v24 = vld [vmem:[%s1289_s3 + $0xa8] sm:$0xff] (!%p214_p10)  ;;  %s860_s12 = scalar_lea.vmem (!%p214_p10), %s1240_s8, 32 }
  0x14   : > { %774 = vmatpush3.bf16.msra.mxu1 (!%p214_p10), %v773_v12  ;;  %744 = vmatprep.subr.bf16.mxu0 (!%p214_p10), %v743_v16  ;;  %v777_v25 = vpack.c.bf16 (!%p214_p10), %v329_v22, %v328_v20  ;;  %v747_v26 = vpack.c.bf16 (!%p214_p10), %v315_v24, %v314_v23  ;;  %v346_v27 = vld [vmem:[%s1289_s3 + $0x1a0] sm:$0xff] (!%p214_p10)  ;;  %v347_v28 = vld [vmem:[%s1289_s3 + $0x1a8] sm:$0xff] (!%p214_p10)  ;;  %v316_v35 = vld [vmem:[%s1289_s3 + $0xb0] sm:$0xff] (!%p214_p10)  ;;  %v364_v12 = vshrl.u32 (!%p214_p10), %v363_v62, 7  ;;  %p861_p12 = scmp.ne.s32.totalorder (!%p214_p10), %s1240_s8, %s860_s12 }
  0x15   : > { %776 = vmatprep.subr.bf16.mxu1 (!%p214_p10), %v775_v17  ;;  %v298_v29 = vld [vmem:[%s1289_s3 + $0x20] sm:$0xff] (!%p214_p10)  ;;  %v779_v30 = vpack.c.bf16 (!%p214_p10), %v347_v28, %v346_v27  ;;  %v299_v31 = vld [vmem:[%s1289_s3 + $0x28] sm:$0xff] (!%p214_p10)  ;;  %v317_v36 = vld [vmem:[%s1289_s3 + $0xb8] sm:$0xff] (!%p214_p10) }
  0x16   : > { %v330_v32 = vld [vmem:[%s1289_s3 + $0x120] sm:$0xff]  ;;  %v331_v33 = vld [vmem:[%s1289_s3 + $0x128] sm:$0xff]  ;;  %v749_v34 = vpack.c.bf16 %v299_v31, %v298_v29  ;;  %v348_v37 = vld [vmem:[%s1289_s3 + $0x1b0] sm:$0xff]  ;;  %v751_v39 = vpack.c.bf16 %v317_v36, %v316_v35  ;;  %s1135_s11 = scalar_select %p259_p11, %s930_s18, 1  ;;  %v365_v28 = vsub.s32 %v362_v11, %v364_v12 }
  0x17   : > { %746 = vmatpush3.bf16.msra.mxu0 %v745_v21  ;;  %v781_v38 = vpack.c.bf16 %v331_v33, %v330_v32  ;;  %v349_v40 = vld [vmem:[%s1289_s3 + $0x1b8] sm:$0xff]  ;;  %v300_v41 = vld [vmem:[%s1289_s3 + $0x30] sm:$0xff]  ;;  %v318_v46 = vld [vmem:[%s1289_s3 + $0xc0] sm:$0xff]  ;;  %p862_p13 = pnand %p861_p12, %p1008_p4  ;;  %s942_s18 = smov [#allocation2]  }
  0x18   : > { %778 = vmatpush3.bf16.msra.mxu1 %v777_v25  ;;  %748 = vmatprep.subr.bf16.mxu0 %v747_v26  ;;  %v301_v42 = vld [vmem:[%s1289_s3 + $0x38] sm:$0xff]  ;;  %v783_v43 = vpack.c.bf16 %v349_v40, %v348_v37  ;;  %v332_v44 = vld [vmem:[%s1289_s3 + $0x130] sm:$0xff]  ;;  %v319_v47 = vld [vmem:[%s1289_s3 + $0xc8] sm:$0xff]  ;;  %s667_s13 = sshll.u32 %s1135_s11, 3  ;;  %s662_s5 = sshll.u32 %s1135_s11, 1 }
  0x19   : > { %780 = vmatprep.subr.bf16.mxu1 %v779_v30  ;;  %v333_v45 = vld [vmem:[%s1289_s3 + $0x138] sm:$0xff]  ;;  %v350_v48 = vld [vmem:[%s1289_s3 + $0x1c0] sm:$0xff]  ;;  %v351_v49 = vld [vmem:[%s1289_s3 + $0x1c8] sm:$0xff]  ;;  %v753_v50 = vpack.c.bf16 %v301_v42, %v300_v41  ;;  %v755_v52 = vpack.c.bf16 %v319_v47, %v318_v46  ;;  %s267_s14 = scalar_lea.vmem %s1286_s0, %s667_s13  ;;  %s276_s24 = scalar_lea.vmem %s1287_s1, %s667_s13  ;;  %v941_v47 = vmov 0.0  }
  0x1a   : > { %v785_v51 = vpack.c.bf16 %v333_v45, %v332_v44  ;;  %v302_v53 = vld [vmem:[%s1289_s3 + $0x40] sm:$0xff]  ;;  %v303_v54 = vld [vmem:[%s1289_s3 + $0x48] sm:$0xff]  ;;  %v787_v56 = vpack.c.bf16 %v351_v49, %v350_v48  ;;  %v320_v58 = vld [vmem:[%s1289_s3 + $0xd0] sm:$0xff]  ;;  %289 = vst.msk [vmem:[%s258_s30] sm:$0x3] %vm288_vm0, %v941_v47  ;;  %s1238_s13 = scalar_lea.hbm %s1290_s4, %s664_s7  ;;  %p863_p0 = pneg %p862_p13 }
  0x1b   : > { %750 = vmatpush3.bf16.msra.mxu0 %v749_v34  ;;  %v334_v55 = vld [vmem:[%s1289_s3 + $0x140] sm:$0xff]  ;;  %v335_v57 = vld [vmem:[%s1289_s3 + $0x148] sm:$0xff]  ;;  %v321_v59 = vld [vmem:[%s1289_s3 + $0xd8] sm:$0xff]  ;;  %v757_v1 = vpack.c.bf16 %v303_v54, %v302_v53  ;;  %s864_s21 = sshll.u32 %s942_s18, 4  ;;  %s865_s21 = int_to_ptr.vmem [resolvable:$false] %s864_s21 }
  0x1c   : > { %782 = vmatpush3.bf16.msra.mxu1 %v781_v38  ;;  %752 = vmatprep.subr.bf16.mxu0 %v751_v39  ;;  %v352_v63 = vld [vmem:[%s1289_s3 + $0x1d0] sm:$0xff]  ;;  %v353_v0 = vld [vmem:[%s1289_s3 + $0x1d8] sm:$0xff]  ;;  %v789_v2 = vpack.c.bf16 %v335_v57, %v334_v55  ;;  %v759_v3 = vpack.c.bf16 %v321_v59, %v320_v58  ;;  %v322_v9 = vld [vmem:[%s1289_s3 + $0xe0] sm:$0xff]  ;;  %s866_s22 = scalar_lea.vmem %s865_s21, 64  ;;  %p867_p1 = scmp.lt.s32.totalorder %s1240_s8, %s865_s21 }
  0x1d   : > { %784 = vmatprep.subr.bf16.mxu1 %v783_v43  ;;  %v304_v4 = vld [vmem:[%s1289_s3 + $0x50] sm:$0xff]  ;;  %v305_v5 = vld [vmem:[%s1289_s3 + $0x58] sm:$0xff]  ;;  %v791_v7 = vpack.c.bf16 %v353_v0, %v352_v63  ;;  %v323_v10 = vld [vmem:[%s1289_s3 + $0xe8] sm:$0xff]  ;;  %p868_p2 = scmp.lt.s32.totalorder %s866_s22, %s860_s12 }
  0x1e   : > { %v336_v6 = vld [vmem:[%s1289_s3 + $0x150] sm:$0xff]  ;;  %v337_v8 = vld [vmem:[%s1289_s3 + $0x158] sm:$0xff]  ;;  %v354_v13 = vld [vmem:[%s1289_s3 + $0x1e0] sm:$0xff]  ;;  %v761_v15 = vpack.c.bf16 %v305_v5, %v304_v4  ;;  %v763_v19 = vpack.c.bf16 %v323_v10, %v322_v9 }
  0x1f   : > { %754 = vmatpush3.bf16.msra.mxu0 %v753_v50  ;;  %v355_v14 = vld [vmem:[%s1289_s3 + $0x1e8] sm:$0xff]  ;;  %v306_v16 = vld [vmem:[%s1289_s3 + $0x60] sm:$0xff]  ;;  %v793_v18 = vpack.c.bf16 %v337_v8, %v336_v6  ;;  %v324_v25 = vld [vmem:[%s1289_s3 + $0xf0] sm:$0xff]  ;;  %p869_p3 = por %p868_p2, %p867_p1 }
  0x20   : > { %786 = vmatpush3.bf16.msra.mxu1 %v785_v51  ;;  %756 = vmatprep.subr.bf16.mxu0 %v755_v52  ;;  %v307_v17 = vld [vmem:[%s1289_s3 + $0x68] sm:$0xff]  ;;  %v338_v20 = vld [vmem:[%s1289_s3 + $0x160] sm:$0xff]  ;;  %v795_v23 = vpack.c.bf16 %v355_v14, %v354_v13  ;;  %v325_v26 = vld [vmem:[%s1289_s3 + $0xf8] sm:$0xff] }
  0x21   : > { %788 = vmatprep.subr.bf16.mxu1 %v787_v56  ;;  %v290_v21 = vld [vmem:[%s267_s14] sm:$0xff]  ;;  %v339_v24 = vld [vmem:[%s1289_s3 + $0x168] sm:$0xff]  ;;  %v356_v29 = vld [vmem:[%s1289_s3 + $0x1f0] sm:$0xff]  ;;  %v765_v31 = vpack.c.bf16 %v307_v17, %v306_v16  ;;  %v767_v34 = vpack.c.bf16 %v325_v26, %v324_v25  ;;  %p870_p5 = pnand %p869_p3, %p863_p0 }
  0x22   : > { %v291_v22 = vld [vmem:[%s276_s24] sm:$0xff]  ;;  %v357_v30 = vld [vmem:[%s1289_s3 + $0x1f8] sm:$0xff]  ;;  %v797_v33 = vpack.c.bf16 %v339_v24, %v338_v20  ;;  %v308_v35 = vld [vmem:[%s1289_s3 + $0x70] sm:$0xff]  ;;  %s283_s24 = scalar_lea.vmem %s1288_s2, %s662_s5 }
  0x23   : > { %758 = vmatpush3.bf16.msra.mxu0 %v757_v1  ;;  %v292_v27 = vsub.f32 %v290_v21, %v291_v22  ;;  %v309_v36 = vld [vmem:[%s1289_s3 + $0x78] sm:$0xff]  ;;  %v799_v37 = vpack.c.bf16 %v357_v30, %v356_v29  ;;  %v340_v38 = vld [vmem:[%s1289_s3 + $0x170] sm:$0xff]  ;;  %v521_v54 = vld [vmem:[%s283_s24] sm:$0x3] }
  0x24   : > { %790 = vmatpush3.bf16.msra.mxu1 %v789_v2  ;;  %760 = vmatprep.subr.bf16.mxu0 %v759_v3  ;;  %v341_v39 = vld [vmem:[%s1289_s3 + $0x178] sm:$0xff]  ;;  %v769_v42 = vpack.c.bf16 %v309_v36, %v308_v35  ;;  %v520_v56 = vld [vmem:[%s258_s30] sm:$0x3] }
  0x25   : > { %792 = vmatprep.subr.bf16.mxu1 %v791_v7  ;;  %v293_v32 = vand.u32 2147483647, %v292_v27  ;;  %v801_v45 = vpack.c.bf16 %v341_v39, %v340_v38 }
  0x27   : > { %762 = vmatpush3.bf16.msra.mxu0 %v761_v15  ;;  %v366_v40 = vrot.slane %v293_v32, %v365_v28  ;;  %v359_v41 = vcombine.high %v293_v32, %v293_v32 }
  0x28   : > { %794 = vmatpush3.bf16.msra.mxu1 %v793_v18  ;;  %764 = vmatprep.subr.bf16.mxu0 %v763_v19 }
  0x29   : > { %796 = vmatprep.subr.bf16.mxu1 %v795_v23  ;;  %v374_v43 = vcombine.high %v366_v40, %v366_v40  ;;  %v373_v44 = vrot.slane %v359_v41, %v365_v28 }
  0x2b   : > { %766 = vmatpush3.bf16.msra.mxu0 %v765_v31  ;;  %444 = vmatprep.mubr.f32.mxu0 %v374_v43  ;;  %v375_v46 = vcombine.high %v373_v44, %v373_v44 }
  0x2c   : > { %798 = vmatpush3.bf16.msra.mxu1 %v797_v33  ;;  %768 = vmatprep.subr.bf16.mxu0 %v767_v34 }
  0x2d   : > { %800 = vmatprep.subr.bf16.mxu1 %v799_v37  ;;  %514 = vmatprep.mubr.f32.mxu1 %v375_v46 }
  0x2f   : > { %770 = vmatpush3.bf16.msra.mxu0 %v769_v42 }
  0x30   : > { %802 = vmatpush3.bf16.msra.mxu1 %v801_v45 }
  0x32   : > { %445 = vmatmul.mubr.f32.vlgmr.msra.gmra.mrb[0].mxu0 %v366_v40 }
  0x33   : > { %515 = vmatmul.mubr.f32.vlgmr.msra.gmra.mrb[0].mxu1 %v373_v44 }
 0x105   : > { %v701_v48 = vpop.f32.mrb[0].mxu0 }
 0x106   : > { %v736_v49 = vpop.f32.mrb[0].mxu1  ;;  %v702_v50 = vpop.f32.mrb[1].mxu0 }
 0x107   : > { %v703_v51 = vadd.f32 %v702_v50, %v701_v48  ;;  %v737_v52 = vpop.f32.mrb[1].mxu1 }
 0x108   : > { %v738_v53 = vadd.f32 %v737_v52, %v736_v49 }
 0x10a   : > { %v517_v55 = vadd.f32 %v738_v53, %v703_v51 }
 0x10c   : > { %v522_v57 = vmul.f32 %v521_v54, %v517_v55 }
 0x10e   : > { %v523_v58 = vadd.f32 %v522_v57, %v520_v56 }
 0x110   : > { %525 = vst.msk [vmem:[%s258_s30] sm:$0x3] %vm288_vm0, %v523_v58 }
 0x111   : > { %873 = shalt.err (!%p870_p5)
}
 0x112   : > { %s874_s26 = scalar_lea.hbm %s1238_s13, 32  ;;  %s878_s5 = scalar_lea.hbm %s1290_s4, 64 }
 0x113   : > { %p875_p6 = scmp.ne.s32.totalorder %s1238_s13, %s874_s26  ;;  %p879_p10 = scmp.lt.u32.totalorder %s1238_s13, %s1290_s4 }
 0x114   : > { %p880_p11 = scmp.lt.u32.totalorder %s878_s5, %s874_s26  ;;  %p882_p13 = scmp.lt.u32.totalorder %s874_s26, %s1238_s13 }
 0x115   : > { %p876_p7 = pnand %p875_p6, %p1008_p4 }
 0x116   : > { %p881_p12 = por %p880_p11, %p879_p10 }
 0x117   : > { %p877_p9 = pneg %p876_p7 }
 0x118   : > { %p883_p0 = por %p882_p13, %p881_p12 }
 0x11a   : > { %p884_p1 = pnand %p883_p0, %p877_p9 }
 0x11c   : > { %887 = shalt.err (!%p884_p1)
}
 0x11d   : > { %803 = dma.vmem_to_hbm [thread:$0]  (%p1008_p4), %s1240_s8, 32, %s1238_s13, %s527_s10  }
 0x11e PF: > { %p809_p2 = scmp.ge.s32.totalorder %s938_s20, 2  ;;  %s552_s24 = sand.u32 1, %s918_s15  }
 0x11f   : > { %s553_s7 = scalar_lea.sflag [#allocation3], %s552_s24 }
 0x120   : > { %p806_p3 = pnand %p809_p2, %p1015_p8 }
 0x122   : > { %913 = dma.done.wait (!%p806_p3), %s553_s7, 32  }
 0x123   : > { %915 = vsyncadd (!%p806_p3), %s553_s7, 4294967264  ;;  %s17_s20 = sadd.s32 1, %s938_s20   ;;  %s1293_s15 = smov %s922_s16 }
 0x124   : > { %p14_p5 = scmp.ge.s32.totalorder %s17_s20, 4   ;;  %s1294_s16 = smov %s926_s17 }
 0x125   : > { %s1295_s17 = smov %s1021_s28  ;;  %s1296_s18 = smov %s934_s19 }
 0x126   : > { %s1297_s19 = smov %s1299_s23  ;;  %16 = sbr.rel (!%p14_p5) target bundleno = 4 (0x4), region = 81 }
 0x12d   :  { %558 = vsyncpa [#allocation3], 1 }
 0x12e   :  { %560 = vsyncpa [#allocation3 + $0x1], 1 }

</bundles_post_ra>
